<compile_context>
chip_gen: v7x
topology: tpu7x:2x2x1
jax: 0.10.0
libtpu: 0.0.40
codegen_flags: <defaults>
</compile_context>

<pallas_src>
import jax
import jax.numpy as jnp
from jax.experimental import pallas as pl
from jax.experimental.pallas import tpu as pltpu


# ---------------------------------------------------------------------------
# Kernel: one row-tile of the discriminator
# ---------------------------------------------------------------------------
def _disc_kernel(h_ref, x_ref, xc_ref,
                 wp_ref, rep_ref, sel_ref, bb_ref, wl1_ref, wl2_ref, bl_ref,
                 out_ref):
    # h_ref  : (tm, h_ft)
    # x_ref  : (tm, x_ft)        positive samples
    # xc_ref : (tm, x_ft)        corrupted samples
    # wp_ref : (h_ft, K*x_ft)    bilinear weight packed: lane c = k*x_ft + j -> W[k, i, j]
    # rep_ref: (x_ft, K*x_ft)    0/1 replication matrix: (x @ rep)[m, k*x_ft+j] = x[m, j]
    # sel_ref: (K*x_ft, K)       0/1 selection matrix: sums over j inside each k block
    # bb_ref : (1, K)            bilinear bias
    # wl1_ref: (K, 2)            linear head weight in column 0, zeros in column 1
    # wl2_ref: (K, 2)            zeros in column 0, linear head weight in column 1
    # bl_ref : (1, 2)            linear head bias broadcast to both columns
    # out_ref: (tm, 2)
    h = h_ref[...]
    x = x_ref[...]
    xc = xc_ref[...]

    # Fused bilinear: hw[m, k*x_ft + j] = sum_i h[m, i] * W[k, i, j]
    # One wide MXU matmul, shared between the (h, x) and (h, x_c) branches.
    hw = jnp.dot(h, wp_ref[...], preferred_element_type=jnp.float32)

    # Replicate x / x_c across the K blocks via constant 0/1 matmuls
    # (no lane-strided broadcasts, no in-kernel reshapes).
    rep = rep_ref[...]
    x_rep = jnp.dot(x, rep, preferred_element_type=jnp.float32)
    xc_rep = jnp.dot(xc, rep, preferred_element_type=jnp.float32)

    # Group-reduce over j within each k block with a 0/1 selection matmul.
    sel = sel_ref[...]
    bil1 = jnp.dot(hw * x_rep, sel, preferred_element_type=jnp.float32)   # (tm, K)
    bil2 = jnp.dot(hw * xc_rep, sel, preferred_element_type=jnp.float32)  # (tm, K)

    bb = bb_ref[...]
    r1 = jnp.maximum(bil1 + bb, 0.0)
    r2 = jnp.maximum(bil2 + bb, 0.0)

    # Linear head for both branches, emitted as a single width-2 store.
    o = (jnp.dot(r1, wl1_ref[...], preferred_element_type=jnp.float32)
         + jnp.dot(r2, wl2_ref[...], preferred_element_type=jnp.float32)
         + bl_ref[...])
    out_ref[...] = jax.nn.sigmoid(o)


# ---------------------------------------------------------------------------
# Parameter init (PyTorch nn.Bilinear / nn.Linear layouts) and one-time packing
# ---------------------------------------------------------------------------
def init_discriminator_params(key, h_ft, x_ft, hid_ft):
    k1, k2, k3, k4 = jax.random.split(key, 4)
    bnd_b = 1.0 / (h_ft ** 0.5)      # nn.Bilinear default bound
    bnd_l = 1.0 / (hid_ft ** 0.5)    # nn.Linear default bound
    return dict(
        wb=jax.random.uniform(k1, (hid_ft, h_ft, x_ft), jnp.float32, -bnd_b, bnd_b),
        bb=jax.random.uniform(k2, (hid_ft,), jnp.float32, -bnd_b, bnd_b),
        wl=jax.random.uniform(k3, (1, hid_ft), jnp.float32, -bnd_l, bnd_l),
        bl=jax.random.uniform(k4, (1,), jnp.float32, -bnd_l, bnd_l),
    )


def pack_discriminator_params(params):
    """Precompute packed weights and constant 0/1 matrices once (not per call)."""
    wb = params['wb']                              # (K, h_ft, x_ft)
    K, h_ft, x_ft = wb.shape
    wp = jnp.transpose(wb, (1, 0, 2)).reshape(h_ft, K * x_ft)          # lane c = k*x_ft + j
    rep = jnp.tile(jnp.eye(x_ft, dtype=jnp.float32), (1, K))           # (x_ft, K*x_ft)
    sel = jnp.kron(jnp.eye(K, dtype=jnp.float32),
                   jnp.ones((x_ft, 1), jnp.float32))                   # (K*x_ft, K)
    wl_col = params['wl'].reshape(1, K).T                              # (K, 1)
    zeros = jnp.zeros((K, 1), jnp.float32)
    wl1 = jnp.concatenate([wl_col, zeros], axis=1)                     # (K, 2)
    wl2 = jnp.concatenate([zeros, wl_col], axis=1)                     # (K, 2)
    bl2 = jnp.tile(params['bl'].reshape(1, 1), (1, 2))                 # (1, 2)
    return dict(wp=wp, rep=rep, sel=sel, bb=params['bb'].reshape(1, K),
                wl1=wl1, wl2=wl2, bl2=bl2)


# ---------------------------------------------------------------------------
# Wrapper: flatten batch into rows, row-tiled parallel grid
# ---------------------------------------------------------------------------
def discriminator_forward(h, x, x_c, packed, *, row_tile=256):
    B, N, h_ft = h.shape
    x_ft = x.shape[-1]
    K = packed['bb'].shape[-1]
    M = B * N

    hf = h.reshape(M, h_ft).astype(jnp.float32)
    xf = x.reshape(M, x_ft).astype(jnp.float32)
    xcf = x_c.reshape(M, x_ft).astype(jnp.float32)

    # Row tile: whole problem in one grid step when small, else 8-aligned tiles.
    if M <= row_tile:
        tm = M
    else:
        tm = max(8, (row_tile // 8) * 8)
    Mp = ((M + tm - 1) // tm) * tm
    if Mp != M:
        pad = ((0, Mp - M), (0, 0))
        hf = jnp.pad(hf, pad)
        xf = jnp.pad(xf, pad)
        xcf = jnp.pad(xcf, pad)

    weights = (packed['wp'], packed['rep'], packed['sel'], packed['bb'],
               packed['wl1'], packed['wl2'], packed['bl2'])

    def const_spec(a):
        return pl.BlockSpec(a.shape, lambda i, _n=a.ndim: (0,) * _n)

    in_specs = [
        pl.BlockSpec((tm, h_ft), lambda i: (i, 0)),
        pl.BlockSpec((tm, x_ft), lambda i: (i, 0)),
        pl.BlockSpec((tm, x_ft), lambda i: (i, 0)),
    ] + [const_spec(w) for w in weights]

    out = pl.pallas_call(
        _disc_kernel,
        out_shape=jax.ShapeDtypeStruct((Mp, 2), jnp.float32),
        grid_spec=pltpu.PrefetchScalarGridSpec(
            num_scalar_prefetch=0,
            grid=(Mp // tm,),
            in_specs=in_specs,
            out_specs=pl.BlockSpec((tm, 2), lambda i: (i, 0)),
        ),
        compiler_params=pltpu.CompilerParams(
            dimension_semantics=("parallel",)),
    )(hf, xf, xcf, *weights)

    return out[:M].reshape(B, N, 2)


# ---------------------------------------------------------------------------
# Pure-JAX reference (mirrors the PyTorch forward) for a sanity check
# ---------------------------------------------------------------------------
def discriminator_ref(h, x, x_c, p):
    def bil(hh, xx):
        return jnp.einsum('bni,kij,bnj->bnk', hh, p['wb'], xx) + p['bb']
    r1 = jax.nn.relu(bil(h, x))
    r2 = jax.nn.relu(bil(h, x_c))
    o1 = r1 @ p['wl'].T + p['bl']
    o2 = r2 @ p['wl'].T + p['bl']
    return jax.nn.sigmoid(jnp.concatenate([o1, o2], axis=-1))


if __name__ == "__main__":
    B, N = 2, 16                    # batch, nodes
    h_ft, x_ft, hid_ft = 32, 16, 32  # Bilinear in1 / in2 / out features

    key = jax.random.PRNGKey(0)
    k1, k2, k3, kp = jax.random.split(key, 4)
    h = jax.random.normal(k1, (B, N, h_ft), jnp.float32)
    x = jax.random.normal(k2, (B, N, x_ft), jnp.float32)
    x_c = jax.random.normal(k3, (B, N, x_ft), jnp.float32)

    params = init_discriminator_params(kp, h_ft, x_ft, hid_ft)
    packed = pack_discriminator_params(params)   # one-time weight packing

    out = discriminator_forward(h, x, x_c, packed)
    out = jax.block_until_ready(out)

    ref = discriminator_ref(h, x, x_c, params)
    assert out.shape == (B, N, 2), out.shape
    max_err = float(jnp.max(jnp.abs(out - ref)))
    assert jnp.allclose(out, ref, atol=1e-3, rtol=1e-3), max_err

    print("KERNEL_OK")
</pallas_src>

<mosaic_0001>
module attributes {stable_mosaic.version = 11 : i64} {
  func.func @_disc_kernel(%arg0: i32, %arg1: memref<32x32xf32, #tpu.memory_space<vmem>>, %arg2: memref<32x16xf32, #tpu.memory_space<vmem>>, %arg3: memref<32x16xf32, #tpu.memory_space<vmem>>, %arg4: memref<32x512xf32, #tpu.memory_space<vmem>>, %arg5: memref<16x512xf32, #tpu.memory_space<vmem>>, %arg6: memref<512x32xf32, #tpu.memory_space<vmem>>, %arg7: memref<1x32xf32, #tpu.memory_space<vmem>>, %arg8: memref<32x2xf32, #tpu.memory_space<vmem>>, %arg9: memref<32x2xf32, #tpu.memory_space<vmem>>, %arg10: memref<1x2xf32, #tpu.memory_space<vmem>>, %arg11: memref<32x2xf32, #tpu.memory_space<vmem>>) attributes {dimension_semantics = [#tpu.dimension_semantics<parallel>], iteration_bounds = array<i64: 1>, scalar_prefetch = 0 : i64, scratch_operands = 0 : i64, tpu.core_type = #tpu.core_type<tc>, window_params = [{transform_indices = @transform_0, window_bounds = array<i64: 32, 32>}, {transform_indices = @transform_1, window_bounds = array<i64: 32, 16>}, {transform_indices = @transform_2, window_bounds = array<i64: 32, 16>}, {pipeline_mode = #tpu.pipeline_mode<synchronous>, transform_indices = @transform_3, window_bounds = array<i64: 32, 512>}, {pipeline_mode = #tpu.pipeline_mode<synchronous>, transform_indices = @transform_4, window_bounds = array<i64: 16, 512>}, {pipeline_mode = #tpu.pipeline_mode<synchronous>, transform_indices = @transform_5, window_bounds = array<i64: 512, 32>}, {pipeline_mode = #tpu.pipeline_mode<synchronous>, transform_indices = @transform_6, window_bounds = array<i64: 1, 32>}, {pipeline_mode = #tpu.pipeline_mode<synchronous>, transform_indices = @transform_7, window_bounds = array<i64: 32, 2>}, {pipeline_mode = #tpu.pipeline_mode<synchronous>, transform_indices = @transform_8, window_bounds = array<i64: 32, 2>}, {pipeline_mode = #tpu.pipeline_mode<synchronous>, transform_indices = @transform_9, window_bounds = array<i64: 1, 2>}, {transform_indices = @transform_10, window_bounds = array<i64: 32, 2>}]} {
    %c0 = arith.constant 0 : index
    %c0_0 = arith.constant 0 : index
    %0 = vector.load %arg1[%c0, %c0_0] : memref<32x32xf32, #tpu.memory_space<vmem>>, vector<32x32xf32>
    %c0_1 = arith.constant 0 : index
    %c0_2 = arith.constant 0 : index
    %1 = vector.load %arg2[%c0_1, %c0_2] : memref<32x16xf32, #tpu.memory_space<vmem>>, vector<32x16xf32>
    %c0_3 = arith.constant 0 : index
    %c0_4 = arith.constant 0 : index
    %2 = vector.load %arg3[%c0_3, %c0_4] : memref<32x16xf32, #tpu.memory_space<vmem>>, vector<32x16xf32>
    %c0_5 = arith.constant 0 : index
    %c0_6 = arith.constant 0 : index
    %3 = vector.load %arg4[%c0_5, %c0_6] : memref<32x512xf32, #tpu.memory_space<vmem>>, vector<32x512xf32>
    %cst = arith.constant dense<0.000000e+00> : vector<32x512xf32>
    %4 = tpu.matmul %0, %3, %cst {dimension_numbers = #tpu.dot_dimension_numbers<[1], [0], [0], [1], [0, 0, 1, 1], [], []>} : vector<32x32xf32>, vector<32x512xf32>, vector<32x512xf32> -> vector<32x512xf32>
    %c0_7 = arith.constant 0 : index
    %c0_8 = arith.constant 0 : index
    %5 = vector.load %arg5[%c0_7, %c0_8] : memref<16x512xf32, #tpu.memory_space<vmem>>, vector<16x512xf32>
    %cst_9 = arith.constant dense<0.000000e+00> : vector<32x512xf32>
    %6 = tpu.matmul %1, %5, %cst_9 {dimension_numbers = #tpu.dot_dimension_numbers<[1], [0], [0], [1], [0, 0, 1, 1], [], []>} : vector<32x16xf32>, vector<16x512xf32>, vector<32x512xf32> -> vector<32x512xf32>
    %cst_10 = arith.constant dense<0.000000e+00> : vector<32x512xf32>
    %7 = tpu.matmul %2, %5, %cst_10 {dimension_numbers = #tpu.dot_dimension_numbers<[1], [0], [0], [1], [0, 0, 1, 1], [], []>} : vector<32x16xf32>, vector<16x512xf32>, vector<32x512xf32> -> vector<32x512xf32>
    %c0_11 = arith.constant 0 : index
    %c0_12 = arith.constant 0 : index
    %8 = vector.load %arg6[%c0_11, %c0_12] : memref<512x32xf32, #tpu.memory_space<vmem>>, vector<512x32xf32>
    %9 = arith.mulf %4, %6 : vector<32x512xf32>
    %cst_13 = arith.constant dense<0.000000e+00> : vector<32x32xf32>
    %10 = tpu.matmul %9, %8, %cst_13 {dimension_numbers = #tpu.dot_dimension_numbers<[1], [0], [0], [1], [0, 0, 1, 1], [], []>} : vector<32x512xf32>, vector<512x32xf32>, vector<32x32xf32> -> vector<32x32xf32>
    %11 = arith.mulf %4, %7 : vector<32x512xf32>
    %cst_14 = arith.constant dense<0.000000e+00> : vector<32x32xf32>
    %12 = tpu.matmul %11, %8, %cst_14 {dimension_numbers = #tpu.dot_dimension_numbers<[1], [0], [0], [1], [0, 0, 1, 1], [], []>} : vector<32x512xf32>, vector<512x32xf32>, vector<32x32xf32> -> vector<32x32xf32>
    %c0_15 = arith.constant 0 : index
    %c0_16 = arith.constant 0 : index
    %13 = vector.load %arg7[%c0_15, %c0_16] : memref<1x32xf32, #tpu.memory_space<vmem>>, vector<1x32xf32>
    %14 = vector.broadcast %13 : vector<1x32xf32> to vector<32x32xf32>
    %15 = arith.addf %10, %14 : vector<32x32xf32>
    %cst_17 = arith.constant 0.000000e+00 : f32
    %16 = vector.broadcast %cst_17 : f32 to vector<32x32xf32>
    %17 = arith.maximumf %15, %16 : vector<32x32xf32>
    %18 = vector.broadcast %13 : vector<1x32xf32> to vector<32x32xf32>
    %19 = arith.addf %12, %18 : vector<32x32xf32>
    %cst_18 = arith.constant 0.000000e+00 : f32
    %20 = vector.broadcast %cst_18 : f32 to vector<32x32xf32>
    %21 = arith.maximumf %19, %20 : vector<32x32xf32>
    %c0_19 = arith.constant 0 : index
    %c0_20 = arith.constant 0 : index
    %22 = vector.load %arg8[%c0_19, %c0_20] : memref<32x2xf32, #tpu.memory_space<vmem>>, vector<32x2xf32>
    %cst_21 = arith.constant dense<0.000000e+00> : vector<32x2xf32>
    %23 = tpu.matmul %17, %22, %cst_21 {dimension_numbers = #tpu.dot_dimension_numbers<[1], [0], [0], [1], [0, 0, 1, 1], [], []>} : vector<32x32xf32>, vector<32x2xf32>, vector<32x2xf32> -> vector<32x2xf32>
    %c0_22 = arith.constant 0 : index
    %c0_23 = arith.constant 0 : index
    %24 = vector.load %arg9[%c0_22, %c0_23] : memref<32x2xf32, #tpu.memory_space<vmem>>, vector<32x2xf32>
    %cst_24 = arith.constant dense<0.000000e+00> : vector<32x2xf32>
    %25 = tpu.matmul %21, %24, %cst_24 {dimension_numbers = #tpu.dot_dimension_numbers<[1], [0], [0], [1], [0, 0, 1, 1], [], []>} : vector<32x32xf32>, vector<32x2xf32>, vector<32x2xf32> -> vector<32x2xf32>
    %26 = arith.addf %23, %25 : vector<32x2xf32>
    %c0_25 = arith.constant 0 : index
    %c0_26 = arith.constant 0 : index
    %27 = vector.load %arg10[%c0_25, %c0_26] : memref<1x2xf32, #tpu.memory_space<vmem>>, vector<1x2xf32>
    %28 = vector.broadcast %27 : vector<1x2xf32> to vector<32x2xf32>
    %29 = arith.addf %26, %28 : vector<32x2xf32>
    %30 = arith.negf %29 : vector<32x2xf32>
    %31 = math.exp %30 : vector<32x2xf32>
    %cst_27 = arith.constant 1.000000e+00 : f32
    %32 = vector.broadcast %cst_27 : f32 to vector<32x2xf32>
    %33 = arith.addf %32, %31 : vector<32x2xf32>
    %34 = arith.divf %32, %33 : vector<32x2xf32>
    %c0_28 = arith.constant 0 : index
    %c0_29 = arith.constant 0 : index
    %35 = vector.load %arg11[%c0_28, %c0_29] : memref<32x2xf32, #tpu.memory_space<vmem>>, vector<32x2xf32>
    tpu.vector_store %arg11[%c0_28, %c0_29], %34 {strides = array<i32>} : memref<32x2xf32, #tpu.memory_space<vmem>>, vector<32x2xf32>,
    return
  }
  func.func @transform_0(%arg0: i32) -> (i32, i32) {
    %c0_i32 = arith.constant 0 : i32
    %c0_i32_0 = arith.constant 0 : i32
    return %arg0, %c0_i32 : i32, i32
  }
  func.func @transform_1(%arg0: i32) -> (i32, i32) {
    %c0_i32 = arith.constant 0 : i32
    %c0_i32_0 = arith.constant 0 : i32
    return %arg0, %c0_i32 : i32, i32
  }
  func.func @transform_2(%arg0: i32) -> (i32, i32) {
    %c0_i32 = arith.constant 0 : i32
    %c0_i32_0 = arith.constant 0 : i32
    return %arg0, %c0_i32 : i32, i32
  }
  func.func @transform_3(%arg0: i32) -> (i32, i32) {
    %c0_i32 = arith.constant 0 : i32
    %c0_i32_0 = arith.constant 0 : i32
    %c0_i32_1 = arith.constant 0 : i32
    return %c0_i32, %c0_i32_0 : i32, i32
  }
  func.func @transform_4(%arg0: i32) -> (i32, i32) {
    %c0_i32 = arith.constant 0 : i32
    %c0_i32_0 = arith.constant 0 : i32
    %c0_i32_1 = arith.constant 0 : i32
    return %c0_i32, %c0_i32_0 : i32, i32
  }
  func.func @transform_5(%arg0: i32) -> (i32, i32) {
    %c0_i32 = arith.constant 0 : i32
    %c0_i32_0 = arith.constant 0 : i32
    %c0_i32_1 = arith.constant 0 : i32
    return %c0_i32, %c0_i32_0 : i32, i32
  }
  func.func @transform_6(%arg0: i32) -> (i32, i32) {
    %c0_i32 = arith.constant 0 : i32
    %c0_i32_0 = arith.constant 0 : i32
    %c0_i32_1 = arith.constant 0 : i32
    return %c0_i32, %c0_i32_0 : i32, i32
  }
  func.func @transform_7(%arg0: i32) -> (i32, i32) {
    %c0_i32 = arith.constant 0 : i32
    %c0_i32_0 = arith.constant 0 : i32
    %c0_i32_1 = arith.constant 0 : i32
    return %c0_i32, %c0_i32_0 : i32, i32
  }
  func.func @transform_8(%arg0: i32) -> (i32, i32) {
    %c0_i32 = arith.constant 0 : i32
    %c0_i32_0 = arith.constant 0 : i32
    %c0_i32_1 = arith.constant 0 : i32
    return %c0_i32, %c0_i32_0 : i32, i32
  }
  func.func @transform_9(%arg0: i32) -> (i32, i32) {
    %c0_i32 = arith.constant 0 : i32
    %c0_i32_0 = arith.constant 0 : i32
    %c0_i32_1 = arith.constant 0 : i32
    return %c0_i32, %c0_i32_0 : i32, i32
  }
  func.func @transform_10(%arg0: i32) -> (i32, i32) {
    %c0_i32 = arith.constant 0 : i32
    %c0_i32_0 = arith.constant 0 : i32
    return %arg0, %c0_i32 : i32, i32
  }
}

</mosaic_0001>

<bundles_post_ra>
// kernel: tpu_custom_call.1
= control target key start
LH: loop header
LB: loop body
LE: loop exit
PB: predicated region body
PF: predicated region fallthrough
CT: control target
= control target key end

     0   :  { %v1799_v3 = vmov 0.0   ;;  %vm63_vm0 = vcmask 261120   ;;  %vm262_vm1 = vcmask 130048   ;;  %vm1331_vm2 = vcmask 15360   ;;  %s2439_s3 = inlined_call_operand.vmem [shape: f32[32,512], index: 3, kind: input, shape index: {}]   ;;  %s2440_s4 = inlined_call_operand.vmem [shape: f32[16,512], index: 4, kind: input, shape index: {}]   ;;  %s2441_s0 = inlined_call_operand.vmem [shape: f32[32,32], index: 0, kind: input, shape index: {}]   ;;  %s2442_s5 = inlined_call_operand.vmem [shape: f32[512,32], index: 5, kind: input, shape index: {}]   ;;  %s2443_s1 = inlined_call_operand.vmem [shape: f32[32,16], index: 1, kind: input, shape index: {}]   ;;  %s2444_s2 = inlined_call_operand.vmem [shape: f32[32,16], index: 2, kind: input, shape index: {}]   ;;  %s2445_s8 = inlined_call_operand.vmem [shape: f32[32,2], index: 8, kind: input, shape index: {}]   ;;  %s2446_s7 = inlined_call_operand.vmem [shape: f32[32,2], index: 7, kind: input, shape index: {}]   ;;  %s2447_s6 = inlined_call_operand.vmem [shape: f32[1,32], index: 6, kind: input, shape index: {}]   ;;  %s2448_s9 = inlined_call_operand.vmem [shape: f32[1,2], index: 9, kind: input, shape index: {}]   ;;  %s2449_s10 = inlined_call_operand.vmem [shape: f32[32,2], index: 10, kind: output, shape index: {}]  }
   0x1   :  { %v48_v0 = vld [vmem:[%s2439_s3 + $0x8] sm:$0xff]  ;;  %v47_v2 = vld [vmem:[%s2439_s3] sm:$0xff]  ;;  %140 = vmatprep.mubr.f32.mxu0 %v1799_v3  ;;  %152 = vmatprep.mubr.f32.mxu1 %v1799_v3  ;;  %v50_v12 = vld [vmem:[%s2439_s3 + $0x18] sm:$0xff] }
   0x2   :  { %v52_v1 = vld [vmem:[%s2439_s3 + $0x28] sm:$0xff]  ;;  %v51_v5 = vld [vmem:[%s2439_s3 + $0x20] sm:$0xff]  ;;  %v54_v13 = vld [vmem:[%s2439_s3 + $0x38] sm:$0xff] }
   0x3   :  { %v1598_v4 = vpack.c.bf16 %v52_v1, %v48_v0  ;;  %v56_v6 = vld [vmem:[%s2439_s3 + $0x48] sm:$0xff]  ;;  %v1600_v8 = vpack.c.bf16 %v51_v5, %v47_v2  ;;  %v55_v10 = vld [vmem:[%s2439_s3 + $0x40] sm:$0xff]  ;;  %v1606_v15 = vpack.c.bf16 %v54_v13, %v50_v12  ;;  %v49_v16 = vld [vmem:[%s2439_s3 + $0x10] sm:$0xff] }
   0x4   :  { %v60_v7 = vld [vmem:[%s2439_s3 + $0x68] sm:$0xff]  ;;  %v59_v11 = vld [vmem:[%s2439_s3 + $0x60] sm:$0xff]  ;;  %v53_v17 = vld [vmem:[%s2439_s3 + $0x30] sm:$0xff] }
   0x5   :  { %v1602_v9 = vpack.c.bf16 %v60_v7, %v56_v6  ;;  %1599 = vmatprep.subr.bf16.mxu0 %v1598_v4  ;;  %1774 = vmatprep.subr.bf16.mxu1 %v1598_v4  ;;  %v1604_v14 = vpack.c.bf16 %v59_v11, %v55_v10  ;;  %v58_v18 = vld [vmem:[%s2439_s3 + $0x58] sm:$0xff]  ;;  %v255_v20 = vld [vmem:[%s2440_s4 + $0x8] sm:$0xff]  ;;  %v254_v23 = vld [vmem:[%s2440_s4] sm:$0xff]  ;;  %v1608_v27 = vpack.c.bf16 %v53_v17, %v49_v16 }
   0x6   :  { %1601 = vmatpush1.bf16.msra.mxu0 %v1600_v8  ;;  %1776 = vmatpush1.bf16.msra.mxu1 %v1600_v8  ;;  %v62_v19 = vld [vmem:[%s2439_s3 + $0x78] sm:$0xff]  ;;  %v259_v21 = vld [vmem:[%s2440_s4 + $0x28] sm:$0xff]  ;;  %v258_v24 = vld [vmem:[%s2440_s4 + $0x20] sm:$0xff] }
   0x7   :  { %1603 = vmatprep.subr.bf16.mxu0 %v1602_v9  ;;  %1775 = vmatprep.subr.bf16.mxu1 %v1602_v9  ;;  %v1614_v22 = vpack.c.bf16 %v259_v21, %v255_v20  ;;  %v35_v25 = vld [vmem:[%s2441_s0] sm:$0xff]  ;;  %v37_v26 = vld [vmem:[%s2441_s0 + $0x10] sm:$0xff]  ;;  %v1610_v28 = vpack.c.bf16 %v62_v19, %v58_v18  ;;  %v1616_v31 = vpack.c.bf16 %v258_v24, %v254_v23  ;;  %v257_v32 = vld [vmem:[%s2440_s4 + $0x18] sm:$0xff] }
   0x8   :  { %v57_v29 = vld [vmem:[%s2439_s3 + $0x50] sm:$0xff]  ;;  %v261_v33 = vld [vmem:[%s2440_s4 + $0x38] sm:$0xff]  ;;  %v36_v34 = vld [vmem:[%s2441_s0 + $0x8] sm:$0xff] }
   0x9   :  { %v61_v30 = vld [vmem:[%s2439_s3 + $0x70] sm:$0xff]  ;;  %v38_v35 = vld [vmem:[%s2441_s0 + $0x18] sm:$0xff]  ;;  %v1618_v37 = vpack.c.bf16 %v261_v33, %v257_v32  ;;  %v659_v40 = vld [vmem:[%s2442_s5 + $0x80] sm:$0xff] }
   0xa   :  { %1605 = vmatpush1.bf16.msra.mxu0 %v1604_v14  ;;  %1777 = vmatpush1.bf16.msra.mxu1 %v1604_v14  ;;  %v1612_v36 = vpack.c.bf16 %v61_v30, %v57_v29  ;;  %v256_v38 = vld [vmem:[%s2440_s4 + $0x10] sm:$0xff]  ;;  %v660_v41 = vld [vmem:[%s2442_s5 + $0x88] sm:$0xff]  ;;  %v39_v42 = vld [vmem:[%s2443_s1] sm:$0xff] }
   0xb   :  { %1607 = vmatprep.subr.bf16.mxu1 %v1606_v15  ;;  %1615 = vmatprep.subr.bf16.mxu0 %v1614_v22  ;;  %v260_v39 = vld [vmem:[%s2440_s4 + $0x30] sm:$0xff]  ;;  %v1958_v44 = vpack.c.bf16 %v660_v41, %v659_v40  ;;  %v40_v45 = vld [vmem:[%s2443_s1 + $0x8] sm:$0xff]  ;;  %v42_v47 = vld [vmem:[%s2443_s1 + $0x18] sm:$0xff] }
   0xc   :  { %v1620_v43 = vpack.c.bf16 %v260_v39, %v256_v38  ;;  %v41_v46 = vld [vmem:[%s2443_s1 + $0x10] sm:$0xff]  ;;  %v643_v48 = vld [vmem:[%s2442_s5] sm:$0xff]  ;;  %v644_v49 = vld [vmem:[%s2442_s5 + $0x8] sm:$0xff] }
   0xd   :  { %1340 = vmatmul.mubr.msk.f32.vlgmr.msra.gmra.mrb[0].mxu0 %vm63_vm0, %v35_v25  ;;  %1342 = vmatmul.mubr.msk.f32.vlgmr.msra.gmra.mrb[0].mxu1 %vm63_vm0, %v37_v26  ;;  %v661_v50 = vld [vmem:[%s2442_s5 + $0x90] sm:$0xff]  ;;  %v662_v51 = vld [vmem:[%s2442_s5 + $0x98] sm:$0xff]  ;;  %v691_v52 = vld [vmem:[%s2442_s5 + $0x180] sm:$0xff]  ;;  %v2007_v55 = vpack.c.bf16 %v644_v49, %v643_v48 }
   0xe   :  { %1609 = vmatpush1.bf16.msra.mxu1 %v1608_v27  ;;  %146 = vmatprep.mubr.f32.mxu0 %v1799_v3  ;;  %v692_v53 = vld [vmem:[%s2442_s5 + $0x188] sm:$0xff]  ;;  %v43_v54 = vld [vmem:[%s2444_s2] sm:$0xff]  ;;  %v2009_v56 = vpack.c.bf16 %v662_v51, %v661_v50  ;;  %v645_v57 = vld [vmem:[%s2442_s5 + $0x10] sm:$0xff] }
   0xf   :  { %158 = vmatprep.mubr.f32.mxu1 %v1799_v3  ;;  %1611 = vmatprep.subr.bf16.mxu1 %v1610_v28  ;;  %v646_v58 = vld [vmem:[%s2442_s5 + $0x18] sm:$0xff]  ;;  %v2017_v59 = vpack.c.bf16 %v692_v53, %v691_v52  ;;  %v663_v60 = vld [vmem:[%s2442_s5 + $0xa0] sm:$0xff]  ;;  %v664_v61 = vld [vmem:[%s2442_s5 + $0xa8] sm:$0xff] }
  0x10   :  { %1617 = vmatpush1.bf16.msra.mxu0 %v1616_v31  ;;  %v44_v62 = vld [vmem:[%s2444_s2 + $0x8] sm:$0xff]  ;;  %v2033_v63 = vpack.c.bf16 %v646_v58, %v645_v57  ;;  %v2036_v0 = vpack.c.bf16 %v664_v61, %v663_v60  ;;  %v647_v1 = vld [vmem:[%s2442_s5 + $0x20] sm:$0xff]  ;;  %v665_v4 = vld [vmem:[%s2442_s5 + $0xb0] sm:$0xff] }
  0x11   :  { %1341 = vmatmul.mubr.msk.f32.gmra.mrb[2].mxu0 %vm63_vm0, %v36_v34  ;;  %1343 = vmatmul.mubr.msk.f32.gmra.mrb[2].mxu1 %vm63_vm0, %v38_v35  ;;  %v648_v2 = vld [vmem:[%s2442_s5 + $0x28] sm:$0xff]  ;;  %v666_v5 = vld [vmem:[%s2442_s5 + $0xb8] sm:$0xff]  ;;  %v45_v6 = vld [vmem:[%s2444_s2 + $0x10] sm:$0xff] }
  0x12   :  { %1613 = vmatpush1.bf16.msra.mxu1 %v1612_v36  ;;  %229 = vmatprep.mubr.f32.mxu1 %v1799_v3  ;;  %v2059_v7 = vpack.c.bf16 %v648_v2, %v647_v1  ;;  %v2062_v8 = vpack.c.bf16 %v666_v5, %v665_v4  ;;  %v649_v9 = vld [vmem:[%s2442_s5 + $0x30] sm:$0xff]  ;;  %v650_v10 = vld [vmem:[%s2442_s5 + $0x38] sm:$0xff]  ;;  %v667_v11 = vld [vmem:[%s2442_s5 + $0xc0] sm:$0xff] }
  0x13   :  { %339 = vmatprep.mubr.f32.mxu0 %v1799_v3  ;;  %1619 = vmatprep.subr.bf16.mxu1 %v1618_v37  ;;  %v668_v12 = vld [vmem:[%s2442_s5 + $0xc8] sm:$0xff]  ;;  %v46_v13 = vld [vmem:[%s2444_s2 + $0x18] sm:$0xff]  ;;  %v2084_v14 = vpack.c.bf16 %v650_v10, %v649_v9  ;;  %v675_v15 = vld [vmem:[%s2442_s5 + $0x100] sm:$0xff] }
  0x14   :  { %1623 = vmatprep.subr.bf16.mxu0 %v1614_v22  ;;  %v676_v16 = vld [vmem:[%s2442_s5 + $0x108] sm:$0xff]  ;;  %v2093_v17 = vpack.c.bf16 %v668_v12, %v667_v11  ;;  %v651_v18 = vld [vmem:[%s2442_s5 + $0x40] sm:$0xff]  ;;  %v669_v22 = vld [vmem:[%s2442_s5 + $0xd0] sm:$0xff] }
  0x15   :  { %1344 = vmatmul.mubr.msk.f32.vlgmr.msra.gmra.mrb[4].mxu1 %vm63_vm0, %v35_v25  ;;  %1348 = vmatmul.mubr.msk.f32.vlgmr.msra.gmra.mrb[4].mxu0 %vm262_vm1, %v39_v42  ;;  %v652_v19 = vld [vmem:[%s2442_s5 + $0x48] sm:$0xff]  ;;  %v2104_v20 = vpack.c.bf16 %v676_v16, %v675_v15  ;;  %v670_v23 = vld [vmem:[%s2442_s5 + $0xd8] sm:$0xff]  ;;  %v693_v24 = vld [vmem:[%s2442_s5 + $0x190] sm:$0xff] }
  0x16   :  { %1621 = vmatpush1.bf16.msra.mxu1 %v1620_v43  ;;  %235 = vmatprep.mubr.f32.mxu1 %v1799_v3  ;;  %v2107_v21 = vpack.c.bf16 %v652_v19, %v651_v18  ;;  %v2128_v25 = vpack.c.bf16 %v670_v23, %v669_v22  ;;  %v654_v27 = vld [vmem:[%s2442_s5 + $0x58] sm:$0xff]  ;;  %v677_v30 = vld [vmem:[%s2442_s5 + $0x110] sm:$0xff]  ;;  %v671_v33 = vld [vmem:[%s2442_s5 + $0xe0] sm:$0xff] }
  0x17   :  { %345 = vmatprep.mubr.f32.mxu0 %v1799_v3  ;;  %1625 = vmatpush1.bf16.msra.mxu0 %v1616_v31  ;;  %v678_v31 = vld [vmem:[%s2442_s5 + $0x118] sm:$0xff]  ;;  %v655_v38 = vld [vmem:[%s2442_s5 + $0x60] sm:$0xff]  ;;  %v656_v39 = vld [vmem:[%s2442_s5 + $0x68] sm:$0xff] }
  0x18   :  { %1627 = vmatprep.subr.bf16.mxu1 %v1618_v37  ;;  %1631 = vmatprep.subr.bf16.mxu0 %v1958_v44  ;;  %v2150_v32 = vpack.c.bf16 %v678_v31, %v677_v30  ;;  %v696_v37 = vld [vmem:[%s2442_s5 + $0x1a8] sm:$0xff]  ;;  %v2177_v41 = vpack.c.bf16 %v656_v39, %v655_v38  ;;  %v697_v48 = vld [vmem:[%s2442_s5 + $0x1b0] sm:$0xff]  ;;  %v698_v50 = vld [vmem:[%s2442_s5 + $0x1b8] sm:$0xff] }
  0x19   :  { %1345 = vmatmul.mubr.msk.f32.gmra.mrb[6].mxu1 %vm63_vm0, %v36_v34  ;;  %1349 = vmatmul.mubr.msk.f32.gmra.mrb[6].mxu0 %vm262_vm1, %v40_v45  ;;  %v672_v34 = vld [vmem:[%s2442_s5 + $0xe8] sm:$0xff]  ;;  %v657_v51 = vld [vmem:[%s2442_s5 + $0x70] sm:$0xff]  ;;  %v658_v52 = vld [vmem:[%s2442_s5 + $0x78] sm:$0xff]  ;;  %v2211_v53 = vpack.c.bf16 %v698_v50, %v697_v48 }
  0x1a   :  { %241 = vmatprep.mubr.f32.mxu1 %v1799_v3  ;;  %351 = vmatprep.mubr.f32.mxu0 %v1799_v3  ;;  %v2164_v36 = vpack.c.bf16 %v672_v34, %v671_v33  ;;  %v681_v57 = vld [vmem:[%s2442_s5 + $0x130] sm:$0xff]  ;;  %v682_v58 = vld [vmem:[%s2442_s5 + $0x138] sm:$0xff]  ;;  %v699_v61 = vld [vmem:[%s2442_s5 + $0x1c0] sm:$0xff] }
  0x1b   :  { %v2222_v60 = vpack.c.bf16 %v682_v58, %v681_v57  ;;  %v683_v2 = vld [vmem:[%s2442_s5 + $0x140] sm:$0xff]  ;;  %v684_v4 = vld [vmem:[%s2442_s5 + $0x148] sm:$0xff]  ;;  %v685_v10 = vld [vmem:[%s2442_s5 + $0x150] sm:$0xff] }
  0x1c   :  { %v2242_v5 = vpack.c.bf16 %v684_v4, %v683_v2  ;;  %v686_v11 = vld [vmem:[%s2442_s5 + $0x158] sm:$0xff]  ;;  %v704_v15 = vld [vmem:[%s2442_s5 + $0x1e8] sm:$0xff]  ;;  %v687_v18 = vld [vmem:[%s2442_s5 + $0x160] sm:$0xff] }
  0x1d   :  { %1346 = vmatmul.mubr.msk.f32.gmra.mrb[8].mxu1 %vm63_vm0, %v37_v26  ;;  %1350 = vmatmul.mubr.msk.f32.gmra.mrb[8].mxu0 %vm262_vm1, %v41_v46  ;;  %v653_v26 = vld [vmem:[%s2442_s5 + $0x50] sm:$0xff]  ;;  %v2260_v12 = vpack.c.bf16 %v686_v11, %v685_v10  ;;  %v688_v19 = vld [vmem:[%s2442_s5 + $0x168] sm:$0xff] }
  0x1e   :  { %247 = vmatprep.mubr.f32.mxu1 %v1799_v3  ;;  %357 = vmatprep.mubr.f32.mxu0 %v1799_v3  ;;  %v2141_v29 = vpack.c.bf16 %v654_v27, %v653_v26  ;;  %v2278_v22 = vpack.c.bf16 %v688_v19, %v687_v18  ;;  %v705_v23 = vld [vmem:[%s2442_s5 + $0x1f0] sm:$0xff]  ;;  %v690_v27 = vld [vmem:[%s2442_s5 + $0x178] sm:$0xff] }
  0x1f   :  { %v689_v26 = vld [vmem:[%s2442_s5 + $0x170] sm:$0xff] }
  0x20   :  { %v2296_v30 = vpack.c.bf16 %v690_v27, %v689_v26 }
  0x21   :  { %1347 = vmatmul.mubr.msk.f32.gmra.mrb[10].mxu1 %vm63_vm0, %v38_v35  ;;  %1351 = vmatmul.mubr.msk.f32.gmra.mrb[10].mxu0 %vm262_vm1, %v42_v47  ;;  %v695_v35 = vld [vmem:[%s2442_s5 + $0x1a0] sm:$0xff] }
  0x22   :  { %428 = vmatprep.mubr.f32.mxu1 %v1799_v3  ;;  %529 = vmatprep.mubr.f32.mxu0 %v1799_v3  ;;  %v2175_v40 = vpack.c.bf16 %v696_v37, %v695_v35 }
  0x25   :  { %1352 = vmatmul.mubr.msk.f32.vlgmr.msra.gmra.mrb[12].mxu1 %vm262_vm1, %v39_v42  ;;  %1356 = vmatmul.mubr.msk.f32.vlgmr.msra.gmra.mrb[12].mxu0 %vm262_vm1, %v43_v54  ;;  %v679_v42 = vld [vmem:[%s2442_s5 + $0x120] sm:$0xff] }
  0x26   :  { %434 = vmatprep.mubr.f32.mxu1 %v1799_v3  ;;  %535 = vmatprep.mubr.f32.mxu0 %v1799_v3 }
  0x27   :  { %1629 = vmatpush1.bf16.msra.mxu1 %v1620_v43  ;;  %1633 = vmatpush3.bf16.msra.mxu0 %v2007_v55  ;;  %v680_v43 = vld [vmem:[%s2442_s5 + $0x128] sm:$0xff] }
  0x28   :  { %1635 = vmatprep.subr.bf16.mxu0 %v2009_v56  ;;  %1663 = vmatprep.subr.bf16.mxu1 %v2017_v59 }
  0x29   :  { %1353 = vmatmul.mubr.msk.f32.gmra.mrb[14].mxu1 %vm262_vm1, %v40_v45  ;;  %1357 = vmatmul.mubr.msk.f32.gmra.mrb[14].mxu0 %vm262_vm1, %v44_v62  ;;  %v2186_v45 = vpack.c.bf16 %v680_v43, %v679_v42 }
  0x2a   :  { %440 = vmatprep.mubr.f32.mxu1 %v1799_v3  ;;  %541 = vmatprep.mubr.f32.mxu0 %v1799_v3 }
  0x2b   :  { %1637 = vmatpush3.bf16.msra.mxu0 %v2033_v63 }
  0x2c   :  { %1639 = vmatprep.subr.bf16.mxu0 %v2036_v0 }
  0x2d   :  { %1354 = vmatmul.mubr.msk.f32.gmra.mrb[16].mxu1 %vm262_vm1, %v41_v46  ;;  %1358 = vmatmul.mubr.msk.f32.gmra.mrb[16].mxu0 %vm262_vm1, %v45_v6  ;;  %v673_v46 = vld [vmem:[%s2442_s5 + $0xf0] sm:$0xff] }
  0x2e   :  { %446 = vmatprep.mubr.f32.mxu1 %v1799_v3  ;;  %547 = vmatprep.mubr.f32.mxu0 %v1799_v3 }
  0x2f   :  { %1641 = vmatpush3.bf16.msra.mxu0 %v2059_v7 }
  0x30   :  { %1643 = vmatprep.subr.bf16.mxu0 %v2062_v8 }
  0x31   :  { %1355 = vmatmul.mubr.msk.f32.gmra.mrb[18].mxu1 %vm262_vm1, %v42_v47  ;;  %1359 = vmatmul.mubr.msk.f32.gmra.mrb[18].mxu0 %vm262_vm1, %v46_v13  ;;  %v674_v47 = vld [vmem:[%s2442_s5 + $0xf8] sm:$0xff] }
  0x32   :  { %618 = vmatprep.mubr.f32.mxu1 %v1799_v3  ;;  %v2200_v49 = vpack.c.bf16 %v674_v47, %v673_v46 }
  0x33   :  { %1645 = vmatpush3.bf16.msra.mxu0 %v2084_v14 }
  0x34   :  { %1647 = vmatprep.subr.bf16.mxu0 %v2093_v17 }
  0x35   :  { %1360 = vmatmul.mubr.msk.f32.vlgmr.msra.gmra.mrb[20].mxu1 %vm262_vm1, %v43_v54  ;;  %v2213_v54 = vpack.c.bf16 %v658_v52, %v657_v51 }
  0x36   :  { %624 = vmatprep.mubr.f32.mxu1 %v1799_v3  ;;  %1665 = vmatpush3.bf16.msra.mxu1 %v2104_v20 }
  0x37   :  { %1649 = vmatpush3.bf16.msra.mxu0 %v2107_v21 }
  0x38   :  { %1651 = vmatprep.subr.bf16.mxu0 %v2128_v25 }
  0x39   :  { %1361 = vmatmul.mubr.msk.f32.gmra.mrb[22].mxu1 %vm262_vm1, %v44_v62  ;;  %v700_v62 = vld [vmem:[%s2442_s5 + $0x1c8] sm:$0xff] }
  0x3a   :  { %630 = vmatprep.mubr.f32.mxu1 %v1799_v3  ;;  %v2233_v1 = vpack.c.bf16 %v700_v62, %v699_v61 }
  0x3b   :  { %1653 = vmatpush3.bf16.msra.mxu0 %v2141_v29 }
  0x3c   :  { %1655 = vmatprep.subr.bf16.mxu0 %v2164_v36 }
  0x3d   :  { %1362 = vmatmul.mubr.msk.f32.gmra.mrb[24].mxu1 %vm262_vm1, %v45_v6  ;;  %v701_v6 = vld [vmem:[%s2442_s5 + $0x1d0] sm:$0xff] }
  0x3e   :  { %636 = vmatprep.mubr.f32.mxu1 %v1799_v3  ;;  %v694_v3 = vld [vmem:[%s2442_s5 + $0x198] sm:$0xff] }
  0x3f   :  { %v2139_v28 = vpack.c.bf16 %v694_v3, %v693_v24  ;;  %1657 = vmatpush3.bf16.msra.mxu0 %v2177_v41  ;;  %v706_v24 = vld [vmem:[%s2442_s5 + $0x1f8] sm:$0xff] }
  0x40   :  { %1659 = vmatprep.subr.bf16.mxu0 %v2200_v49  ;;  %v2288_v3 = vpack.c.bf16 %v706_v24, %v705_v23 }
  0x41   :  { %1363 = vmatmul.mubr.msk.f32.gmra.mrb[26].mxu1 %vm262_vm1, %v46_v13  ;;  %1667 = vmatprep.subr.bf16.mxu1 %v2139_v28  ;;  %v703_v13 = vld [vmem:[%s2442_s5 + $0x1e0] sm:$0xff] }
  0x42   :  { %1669 = vmatpush3.bf16.msra.mxu1 %v2150_v32  ;;  %v2270_v16 = vpack.c.bf16 %v704_v15, %v703_v13 }
  0x43   :  { %1671 = vmatprep.subr.bf16.mxu1 %v2175_v40  ;;  %1661 = vmatpush3.bf16.msra.mxu0 %v2213_v54 }
  0x44   :  { %1695 = vmatprep.subr.bf16.mxu0 %v1958_v44  ;;  %v702_v44 = vld [vmem:[%s2442_s5 + $0x1d8] sm:$0xff] }
  0x45   :  { %v2252_v9 = vpack.c.bf16 %v702_v44, %v701_v6 }
  0x46   :  { %1673 = vmatpush3.bf16.msra.mxu1 %v2186_v45 }
  0x47   :  { %1675 = vmatprep.subr.bf16.mxu1 %v2211_v53 }
  0x4a   :  { %1677 = vmatpush3.bf16.msra.mxu1 %v2222_v60 }
  0x4b   :  { %1679 = vmatprep.subr.bf16.mxu1 %v2233_v1 }
  0x4e   :  { %1681 = vmatpush3.bf16.msra.mxu1 %v2242_v5 }
  0x4f   :  { %1683 = vmatprep.subr.bf16.mxu1 %v2252_v9 }
  0x52   :  { %1685 = vmatpush3.bf16.msra.mxu1 %v2260_v12 }
  0x53   :  { %1687 = vmatprep.subr.bf16.mxu1 %v2270_v16 }
  0x56   :  { %1689 = vmatpush3.bf16.msra.mxu1 %v2278_v22 }
  0x57   :  { %1691 = vmatprep.subr.bf16.mxu1 %v2288_v3 }
  0x5a   :  { %1693 = vmatpush3.bf16.msra.mxu1 %v2296_v30 }
  0x5b   :  { %1727 = vmatprep.subr.bf16.mxu1 %v2017_v59 }
  0xe0   :  { %v2301_v31 = vpop.f32.mrb[0].mxu1  ;;  %v142_v33 = vpop.f32.mrb[0].mxu0 }
  0xe1   :  { %v2303_v34 = vpop.f32.mrb[1].mxu1  ;;  %v144_v35 = vpop.f32.mrb[1].mxu0 }
  0xe4   :  { %v2305_v37 = vpop.f32.mrb[2].mxu1  ;;  %v148_v38 = vpop.f32.mrb[2].mxu0 }
  0xe5   :  { %v2307_v39 = vpop.f32.mrb[3].mxu1  ;;  %v150_v42 = vpop.f32.mrb[3].mxu0 }
  0xe8   :  { %v2309_v43 = vpop.f32.mrb[4].mxu1  ;;  %v341_v46 = vpop.f32.mrb[4].mxu0 }
  0xe9   :  { %v707_v47 = vmul.f32 %v341_v46, %v142_v33  ;;  %v2311_v48 = vpop.f32.mrb[5].mxu1  ;;  %v343_v50 = vpop.f32.mrb[5].mxu0 }
  0xea   :  { %v708_v59 = vmul.f32 %v343_v50, %v144_v35 }
  0xec   :  { %v2313_v51 = vpop.f32.mrb[6].mxu1  ;;  %v347_v52 = vpop.f32.mrb[6].mxu0  ;;  %810 = vmatprep.mubr.f32.mxu0 %v708_v59 }
  0xed   :  { %v711_v57 = vmul.f32 %v347_v52, %v148_v38  ;;  %v2315_v58 = vpop.f32.mrb[7].mxu1  ;;  %v349_v61 = vpop.f32.mrb[7].mxu0  ;;  %811 = vmatmul.mubr.f32.vlgmr.msra.gmra.mrb[20].mxu0 %v707_v47 }
  0xee   :  { %v712_v62 = vmul.f32 %v349_v61, %v150_v42  ;;  %1697 = vmatpush3.bf16.msra.mxu0 %v2007_v55 }
  0xef   :  { %1699 = vmatprep.subr.bf16.mxu0 %v2009_v56 }
  0xf0   :  { %v2319_v2 = vpop.f32.mrb[8].mxu1  ;;  %v353_v4 = vpop.f32.mrb[8].mxu0  ;;  %815 = vmatprep.mubr.f32.mxu0 %v712_v62 }
  0xf1   :  { %v715_v6 = vmul.f32 %v353_v4, %v2301_v31  ;;  %v2322_v44 = vpop.f32.mrb[9].mxu1  ;;  %v355_v10 = vpop.f32.mrb[9].mxu0  ;;  %816 = vmatmul.mubr.f32.gmra.mrb[22].mxu0 %v711_v57 }
  0xf2   :  { %v716_v11 = vmul.f32 %v355_v10, %v2303_v34  ;;  %1701 = vmatpush3.bf16.msra.mxu0 %v2033_v63 }
  0xf3   :  { %1703 = vmatprep.subr.bf16.mxu0 %v2036_v0 }
  0xf4   :  { %v2327_v13 = vpop.f32.mrb[10].mxu1  ;;  %v359_v55 = vpop.f32.mrb[10].mxu0  ;;  %820 = vmatprep.mubr.f32.mxu0 %v716_v11 }
  0xf5   :  { %v719_v56 = vmul.f32 %v359_v55, %v2305_v37  ;;  %v2330_v15 = vpop.f32.mrb[11].mxu1  ;;  %v361_v18 = vpop.f32.mrb[11].mxu0  ;;  %821 = vmatmul.mubr.f32.gmra.mrb[24].mxu0 %v715_v6 }
  0xf6   :  { %v720_v19 = vmul.f32 %v361_v18, %v2307_v39  ;;  %1705 = vmatpush3.bf16.msra.mxu0 %v2059_v7 }
  0xf7   :  { %1707 = vmatprep.subr.bf16.mxu0 %v2062_v8 }
  0xf8   :  { %v430_v23 = vpop.f32.mrb[12].mxu1  ;;  %v531_v63 = vpop.f32.mrb[12].mxu0  ;;  %825 = vmatprep.mubr.f32.mxu0 %v720_v19 }
  0xf9   :  { %v709_v0 = vmul.f32 %v430_v23, %v2309_v43  ;;  %v2336_v24 = vmul.f32 %v531_v63, %v142_v33  ;;  %v432_v26 = vpop.f32.mrb[13].mxu1  ;;  %v533_v27 = vpop.f32.mrb[13].mxu0  ;;  %826 = vmatmul.mubr.f32.gmra.mrb[26].mxu0 %v719_v56 }
  0xfa   :  { %v710_v46 = vmul.f32 %v432_v26, %v2311_v48  ;;  %v724_v47 = vmul.f32 %v533_v27, %v144_v35  ;;  %1709 = vmatpush3.bf16.msra.mxu0 %v2084_v14  ;;  %v1364_v27 = vld [vmem:[%s2447_s6] ss:$0 sm:$0xff] }
  0xfb   :  { %1711 = vmatprep.subr.bf16.mxu0 %v2093_v17 }
  0xfc   :  { %v436_v7 = vpop.f32.mrb[14].mxu1  ;;  %v537_v50 = vpop.f32.mrb[14].mxu0  ;;  %895 = vmatprep.mubr.f32.mxu1 %v710_v46  ;;  %984 = vmatprep.mubr.f32.mxu0 %v724_v47 }
  0xfd   :  { %v713_v8 = vmul.f32 %v436_v7, %v2313_v51  ;;  %v727_v59 = vmul.f32 %v537_v50, %v148_v38  ;;  %v438_v52 = vpop.f32.mrb[15].mxu1  ;;  %v539_v33 = vpop.f32.mrb[15].mxu0  ;;  %896 = vmatmul.mubr.f32.vlgmr.msra.gmra.mrb[28].mxu1 %v709_v0 }
  0xfe   :  { %v714_v57 = vmul.f32 %v438_v52, %v2315_v58  ;;  %v728_v61 = vmul.f32 %v539_v33, %v150_v42  ;;  %1713 = vmatpush3.bf16.msra.mxu0 %v2107_v21  ;;  %1729 = vmatpush3.bf16.msra.mxu1 %v2104_v20 }
  0xff   :  { %1715 = vmatprep.subr.bf16.mxu0 %v2128_v25  ;;  %1731 = vmatprep.subr.bf16.mxu1 %v2139_v28 }
 0x100   :  { %v442_v14 = vpop.f32.mrb[16].mxu1  ;;  %v543_v17 = vpop.f32.mrb[16].mxu0  ;;  %900 = vmatprep.mubr.f32.mxu1 %v714_v57 }
 0x101   :  { %v717_v35 = vmul.f32 %v442_v14, %v2319_v2  ;;  %v731_v38 = vmul.f32 %v543_v17, %v2301_v31  ;;  %v444_v62 = vpop.f32.mrb[17].mxu1  ;;  %v545_v4 = vpop.f32.mrb[17].mxu0  ;;  %901 = vmatmul.mubr.f32.gmra.mrb[30].mxu1 %v713_v8 }
 0x102   :  { %v718_v42 = vmul.f32 %v444_v62, %v2322_v44  ;;  %v732_v21 = vmul.f32 %v545_v4, %v2303_v34  ;;  %1717 = vmatpush3.bf16.msra.mxu0 %v2141_v29  ;;  %1733 = vmatpush3.bf16.msra.mxu1 %v2150_v32 }
 0x103   :  { %1719 = vmatprep.subr.bf16.mxu0 %v2164_v36  ;;  %1735 = vmatprep.subr.bf16.mxu1 %v2175_v40 }
 0x104   :  { %v448_v20 = vpop.f32.mrb[18].mxu1  ;;  %v549_v25 = vpop.f32.mrb[18].mxu0  ;;  %905 = vmatprep.mubr.f32.mxu1 %v718_v42 }
 0x105   :  { %v721_v28 = vmul.f32 %v448_v20, %v2327_v13  ;;  %v735_v31 = vmul.f32 %v549_v25, %v2305_v37  ;;  %v450_v6 = vpop.f32.mrb[19].mxu1  ;;  %v551_v10 = vpop.f32.mrb[19].mxu0  ;;  %906 = vmatmul.mubr.f32.gmra.mrb[32].mxu1 %v717_v35 }
 0x106   :  { %v722_v34 = vmul.f32 %v450_v6, %v2330_v15  ;;  %v736_v29 = vmul.f32 %v551_v10, %v2307_v39  ;;  %1721 = vmatpush3.bf16.msra.mxu0 %v2177_v41  ;;  %1737 = vmatpush3.bf16.msra.mxu1 %v2186_v45 }
 0x107   :  { %1723 = vmatprep.subr.bf16.mxu0 %v2200_v49  ;;  %1739 = vmatprep.subr.bf16.mxu1 %v2211_v53 }
 0x108   :  { %v620_v32 = vpop.f32.mrb[20].mxu1  ;;  %910 = vmatprep.mubr.f32.mxu1 %v722_v34 }
 0x109   :  { %v725_v36 = vmul.f32 %v620_v32, %v2309_v43  ;;  %v622_v40 = vpop.f32.mrb[21].mxu1  ;;  %911 = vmatmul.mubr.f32.gmra.mrb[34].mxu1 %v721_v28 }
 0x10a   :  { %v726_v37 = vmul.f32 %v622_v40, %v2311_v48  ;;  %1725 = vmatpush3.bf16.msra.mxu0 %v2213_v54  ;;  %1741 = vmatpush3.bf16.msra.mxu1 %v2222_v60 }
 0x10b   :  { %1743 = vmatprep.subr.bf16.mxu1 %v2233_v1 }
 0x10c   :  { %v626_v41 = vpop.f32.mrb[22].mxu1  ;;  %1069 = vmatprep.mubr.f32.mxu1 %v726_v37 }
 0x10d   :  { %v729_v45 = vmul.f32 %v626_v41, %v2313_v51  ;;  %985 = vmatmul.mubr.f32.vlgmr.msra.gmra.mrb[28].mxu0 %v2336_v24  ;;  %v628_v49 = vpop.f32.mrb[23].mxu1 }
 0x10e   :  { %v730_v53 = vmul.f32 %v628_v49, %v2315_v58  ;;  %989 = vmatprep.mubr.f32.mxu0 %v728_v61  ;;  %1745 = vmatpush3.bf16.msra.mxu1 %v2242_v5  ;;  %v1094_v58 = vld [vmem:[%s2446_s7] sm:$0xff] }
 0x10f   :  { %1747 = vmatprep.subr.bf16.mxu1 %v2252_v9  ;;  %v1098_v9 = vld [vmem:[%s2445_s8] sm:$0xff] }
 0x110   :  { %v632_v39 = vpop.f32.mrb[24].mxu1 }
 0x111   :  { %v733_v54 = vmul.f32 %v632_v39, %v2319_v2  ;;  %990 = vmatmul.mubr.f32.gmra.mrb[30].mxu0 %v727_v59  ;;  %v634_v60 = vpop.f32.mrb[25].mxu1  ;;  %v1095_v2 = vld [vmem:[%s2446_s7 + $0x8] sm:$0xff] }
 0x112   :  { %v734_v1 = vmul.f32 %v634_v60, %v2322_v44  ;;  %994 = vmatprep.mubr.f32.mxu0 %v732_v21  ;;  %1749 = vmatpush3.bf16.msra.mxu1 %v2260_v12  ;;  %v1099_v12 = vld [vmem:[%s2445_s8 + $0x8] sm:$0xff]  ;;  %v2400_v44 = vpack.c.bf16 %v1095_v2, %v1094_v58 }
 0x113   :  { %1751 = vmatprep.subr.bf16.mxu1 %v2270_v16  ;;  %v1758_v16 = vpack.c.bf16 %v1099_v12, %v1098_v9  ;;  %v1096_v9 = vld [vmem:[%s2446_s7 + $0x10] sm:$0xff]  ;;  %v1097_v12 = vld [vmem:[%s2446_s7 + $0x18] sm:$0xff] }
 0x114   :  { %v638_v43 = vpop.f32.mrb[26].mxu1 }
 0x115   :  { %v737_v48 = vmul.f32 %v638_v43, %v2327_v13  ;;  %995 = vmatmul.mubr.f32.gmra.mrb[32].mxu0 %v731_v38  ;;  %v640_v51 = vpop.f32.mrb[27].mxu1  ;;  %1759 = vmatprep.subr.bf16.mxu0 %v1758_v16 }
 0x116   :  { %v738_v5 = vmul.f32 %v640_v51, %v2330_v15  ;;  %999 = vmatprep.mubr.f32.mxu0 %v736_v29  ;;  %1753 = vmatpush3.bf16.msra.mxu1 %v2278_v22  ;;  %v1100_v22 = vld [vmem:[%s2445_s8 + $0x10] sm:$0xff] }
 0x117   :  { %1755 = vmatprep.subr.bf16.mxu1 %v2288_v3  ;;  %1761 = vmatpush3.bf16.msra.mxu0 %v1758_v16  ;;  %v1101_v3 = vld [vmem:[%s2445_s8 + $0x18] sm:$0xff] }
 0x119   :  { %1000 = vmatmul.mubr.f32.gmra.mrb[34].mxu0 %v735_v31 }
 0x11a   :  { %1757 = vmatpush3.bf16.msra.mxu1 %v2296_v30  ;;  %v1762_v30 = vpack.c.bf16 %v1101_v3, %v1100_v22 }
 0x11c   :  { %1763 = vmatprep.subr.bf16.mxu0 %v1762_v30 }
 0x11d   :  { %1070 = vmatmul.mubr.f32.vlgmr.msra.gmra.mrb[36].mxu1 %v725_v36  ;;  %1765 = vmatpush3.bf16.msra.mxu0 %v1762_v30 }
 0x11e   :  { %1074 = vmatprep.mubr.f32.mxu1 %v730_v53  ;;  %1767 = vmatprep.subr.bf16.mxu0 %v2400_v44 }
 0x121   :  { %1075 = vmatmul.mubr.f32.gmra.mrb[38].mxu1 %v729_v45 }
 0x122   :  { %1079 = vmatprep.mubr.f32.mxu1 %v734_v1 }
 0x125   :  { %1080 = vmatmul.mubr.f32.gmra.mrb[40].mxu1 %v733_v54 }
 0x126   :  { %1084 = vmatprep.mubr.f32.mxu1 %v738_v5 }
 0x129   :  { %1085 = vmatmul.mubr.f32.gmra.mrb[42].mxu1 %v737_v48 }
 0x1c0   :  { %v1410_v11 = vpop.f32.mrb[20].mxu0 }
 0x1c1   :  { %v1411_v13 = vpop.f32.mrb[21].mxu0 }
 0x1c2   :  { %v1412_v55 = vadd.f32 %v1411_v13, %v1410_v11  ;;  %v1770_v11 = vpack.c.bf16 %v1097_v12, %v1096_v9 }
 0x1c4   :  { %v1413_v56 = vpop.f32.mrb[22].mxu0  ;;  %v813_v7 = vadd.f32 %v1412_v55, %v1364_v27 }
 0x1c5   :  { %v1414_v15 = vpop.f32.mrb[23].mxu0 }
 0x1c6   :  { %v1415_v18 = vadd.f32 %v1414_v15, %v1413_v56 }
 0x1c8   :  { %v1416_v19 = vpop.f32.mrb[24].mxu0  ;;  %v818_v33 = vadd.f32 %v1415_v18, %v1364_v27 }
 0x1c9   :  { %v1417_v23 = vpop.f32.mrb[25].mxu0 }
 0x1ca   :  { %v1418_v63 = vadd.f32 %v1417_v23, %v1416_v19 }
 0x1cc   :  { %v1419_v0 = vpop.f32.mrb[26].mxu0  ;;  %v823_v35 = vadd.f32 %v1418_v63, %v1364_v27 }
 0x1cd   :  { %v1420_v24 = vpop.f32.mrb[27].mxu0 }
 0x1ce   :  { %v1421_v26 = vadd.f32 %v1420_v24, %v1419_v0 }
 0x1d0   :  { %v1454_v46 = vpop.f32.mrb[28].mxu1  ;;  %v828_v21 = vadd.f32 %v1421_v26, %v1364_v27 }
 0x1d1   :  { %v1455_v47 = vpop.f32.mrb[29].mxu1 }
 0x1d2   :  { %v1456_v50 = vadd.f32 %v1455_v47, %v1454_v46 }
 0x1d4   :  { %v2406_v8 = vadd.f32 %v1456_v50, %v813_v7  ;;  %v1457_v59 = vpop.f32.mrb[30].mxu1 }
 0x1d5   :  { %v1458_v52 = vpop.f32.mrb[31].mxu1 }
 0x1d6   :  { %v1459_v57 = vadd.f32 %v1458_v52, %v1457_v59  ;;  %v916_v0 = vmax.f32 %v2406_v8, 0.0 }
 0x1d8   :  { %v903_v61 = vadd.f32 %v1459_v57, %v818_v33  ;;  %v1460_v14 = vpop.f32.mrb[32].mxu1 }
 0x1d9   :  { %v1461_v17 = vpop.f32.mrb[33].mxu1 }
 0x1da   :  { %v1462_v38 = vadd.f32 %v1461_v17, %v1460_v14  ;;  %v917_v24 = vmax.f32 %v903_v61, 0.0 }
 0x1dc   :  { %v908_v62 = vadd.f32 %v1462_v38, %v823_v35  ;;  %v1463_v4 = vpop.f32.mrb[34].mxu1 }
 0x1dd   :  { %v1464_v42 = vpop.f32.mrb[35].mxu1 }
 0x1de   :  { %v1465_v20 = vadd.f32 %v1464_v42, %v1463_v4  ;;  %v918_v26 = vmax.f32 %v908_v62, 0.0 }
 0x1e0   :  { %v913_v25 = vadd.f32 %v1465_v20, %v828_v21  ;;  %v1498_v28 = vpop.f32.mrb[28].mxu0 }
 0x1e1   :  { %v1499_v31 = vpop.f32.mrb[29].mxu0 }
 0x1e2   :  { %v1500_v6 = vadd.f32 %v1499_v31, %v1498_v28 }
 0x1e4   :  { %v1501_v10 = vpop.f32.mrb[30].mxu0  ;;  %v987_v39 = vadd.f32 %v1500_v6, %v1364_v27 }
 0x1e5   :  { %v1502_v34 = vpop.f32.mrb[31].mxu0 }
 0x1e6   :  { %v1503_v29 = vadd.f32 %v1502_v34, %v1501_v10 }
 0x1e8   :  { %v1504_v32 = vpop.f32.mrb[32].mxu0  ;;  %v992_v48 = vadd.f32 %v1503_v29, %v1364_v27 }
 0x1e9   :  { %v1505_v36 = vpop.f32.mrb[33].mxu0 }
 0x1ea   :  { %v1506_v40 = vadd.f32 %v1505_v36, %v1504_v32 }
 0x1ec   :  { %v1507_v37 = vpop.f32.mrb[34].mxu0  ;;  %v997_v30 = vadd.f32 %v1506_v40, %v1364_v27 }
 0x1ed   :  { %v1508_v41 = vpop.f32.mrb[35].mxu0 }
 0x1ee   :  { %v1509_v45 = vadd.f32 %v1508_v41, %v1507_v37 }
 0x1f0   :  { %v1542_v49 = vpop.f32.mrb[36].mxu1  ;;  %v1002_v15 = vadd.f32 %v1509_v45, %v1364_v27  ;;  %v1373_v27 = vld [vmem:[%s2448_s9] ss:$0 sm:$0xff] }
 0x1f1   :  { %v1543_v53 = vpop.f32.mrb[37].mxu1 }
 0x1f2   :  { %v1544_v54 = vadd.f32 %v1543_v53, %v1542_v49 }
 0x1f4   :  { %v1072_v60 = vadd.f32 %v1544_v54, %v987_v39  ;;  %v1545_v1 = vpop.f32.mrb[38].mxu1 }
 0x1f5   :  { %v1546_v43 = vpop.f32.mrb[39].mxu1 }
 0x1f6   :  { %v1090_v51 = vmax.f32 %v1072_v60, 0.0  ;;  %v1547_v5 = vadd.f32 %v1546_v43, %v1545_v1 }
 0x1f8   :  { %v1077_v16 = vadd.f32 %v1547_v5, %v992_v48  ;;  %v1548_v22 = vpop.f32.mrb[40].mxu1  ;;  %1578 = vmatprep.mubr.msk.f32.mxu0 %vm63_vm0, %v1090_v51 }
 0x1f9   :  { %v1549_v3 = vpop.f32.mrb[41].mxu1 }
 0x1fa   :  { %v1091_v58 = vmax.f32 %v1077_v16, 0.0  ;;  %v1550_v2 = vadd.f32 %v1549_v3, %v1548_v22 }
 0x1fc   :  { %v1082_v13 = vadd.f32 %v1550_v2, %v997_v30  ;;  %v1551_v55 = vpop.f32.mrb[42].mxu1  ;;  %1579 = vmatmul.mubr.msk.f32.vlgmr.msra.gmra.mrb[36].mxu0 %vm63_vm0, %v1091_v58 }
 0x1fd   :  { %v1552_v56 = vpop.f32.mrb[43].mxu1  ;;  %1769 = vmatpush3.bf16.msra.mxu0 %v2400_v44  ;;  %v919_v44 = vmax.f32 %v913_v25, 0.0 }
 0x1fe   :  { %v1092_v18 = vmax.f32 %v1082_v13, 0.0  ;;  %v1553_v19 = vadd.f32 %v1552_v56, %v1551_v55  ;;  %1771 = vmatprep.subr.bf16.mxu0 %v1770_v11 }
 0x200   :  { %v1087_v23 = vadd.f32 %v1553_v19, %v1002_v15  ;;  %1581 = vmatprep.mubr.msk.f32.mxu0 %vm63_vm0, %v1092_v18 }
 0x201   :  { %1773 = vmatpush3.bf16.msra.mxu0 %v1770_v11 }
 0x202   :  { %v1093_v63 = vmax.f32 %v1087_v23, 0.0 }
 0x204   :  { %1582 = vmatmul.mubr.msk.f32.gmra.mrb[38].mxu0 %vm63_vm0, %v1093_v63 }
 0x205   :  { %1592 = vmatprep.mubr.msk.f32.mxu0 %vm63_vm0, %v916_v0 }
 0x208   :  { %1593 = vmatmul.mubr.msk.f32.vlgmr.msra.gmra.mrb[36].mxu0 %vm63_vm0, %v917_v24 }
 0x209   :  { %1595 = vmatprep.mubr.msk.f32.mxu0 %vm63_vm0, %v918_v26 }
 0x20c   :  { %1596 = vmatmul.mubr.msk.f32.gmra.mrb[38].mxu0 %vm63_vm0, %v919_v44 }
 0x2db   :  { %v1594_v46 = vpop.f32.mrb[36].mxu0 }
 0x2dc   :  { %v1304_v47 = vadd.f32 %v1594_v46, %v1373_v27  ;;  %v1277_v7 = vpop.f32.mrb[37].mxu0 }
 0x2dd   :  { %v1303_v50 = vadd.f32 %v1373_v27, %v1277_v7 }
 0x2de   :  { %v1375_v8 = vmul.f32 -1.442695, %v1304_v47 }
 0x2df   :  { %v1374_v59 = vmul.f32 -1.442695, %v1303_v50  ;;  %v1597_v52 = vpop.f32.mrb[38].mxu0 }
 0x2e0   :  { %1783 = vpow2.f32 %v1375_v8  ;;  %v1306_v33 = vadd.f32 %v1597_v52, %v1373_v27  ;;  %v1287_v57 = vpop.f32.mrb[39].mxu0 }
 0x2e1   :  { %1785 = vpow2.f32 %v1374_v59  ;;  %v1305_v61 = vadd.f32 %v1373_v27, %v1287_v57 }
 0x2e2   :  { %v1377_v14 = vmul.f32 -1.442695, %v1306_v33 }
 0x2e3   :  { %v1376_v17 = vmul.f32 -1.442695, %v1305_v61 }
 0x2e4   :  { %1787 = vpow2.f32 %v1377_v14 }
 0x2e5   :  { %1789 = vpow2.f32 %v1376_v17 }
 0x2ea   :  { %v1784_v35 = vpop.eup %1783 }
 0x2eb   :  { %v1786_v38 = vpop.eup %1785  ;;  %v1320_v62 = vadd.f32 1.0, %v1784_v35 }
 0x2ec   :  { %v1319_v4 = vadd.f32 1.0, %v1786_v38 }
 0x2ed   :  { %1791 = vrcp.f32 %v1320_v62 }
 0x2ee   :  { %v1788_v42 = vpop.eup %1787  ;;  %1793 = vrcp.f32 %v1319_v4 }
 0x2ef   :  { %v1790_v21 = vpop.eup %1789  ;;  %v1322_v20 = vadd.f32 1.0, %v1788_v42 }
 0x2f0   :  { %v1321_v25 = vadd.f32 1.0, %v1790_v21 }
 0x2f1   :  { %1795 = vrcp.f32 %v1322_v20 }
 0x2f2   :  { %1797 = vrcp.f32 %v1321_v25 }
 0x2f7   :  { %v1792_v28 = vpop.eup %1791 }
 0x2f8   :  { %v1794_v31 = vpop.eup %1793  ;;  %1333 = vst.msk [vmem:[%s2449_s10 + $0x8] sm:$0xff] %vm1331_vm2, %v1792_v28 }
 0x2f9   :  { %1332 = vst.msk [vmem:[%s2449_s10] sm:$0xff] %vm1331_vm2, %v1794_v31 }
 0x2fb   :  { %v1796_v6 = vpop.eup %1795 }
 0x2fc   :  { %v1798_v10 = vpop.eup %1797  ;;  %1335 = vst.msk [vmem:[%s2449_s10 + $0x18] sm:$0xff] %vm1331_vm2, %v1796_v6 }
 0x2fd   :  { %1334 = vst.msk [vmem:[%s2449_s10 + $0x10] sm:$0xff] %vm1331_vm2, %v1798_v10 }

</bundles_post_ra>
